<compile_context>
chip_gen: v7x
topology: tpu7x:2x2x1
jax: 0.10.0
libtpu: 0.0.40
codegen_flags: <defaults>
</compile_context>

<pallas_src>
import functools

import jax
import jax.numpy as jnp
import numpy as np
from jax.experimental import pallas as pl
from jax.experimental.pallas import tpu as pltpu

LANE = 128          # lanes per vreg
SUB = 8             # f32 sublanes per vreg
FEAT_PAD = 32       # 26 features padded/reordered to 32 rows
MAX_TILE_N = 4096   # lane-tile size for large inputs

# Feature permutation: interleave the two boxes per attribute, classes last.
_BOX_PERM = np.array([0, 5, 1, 6, 2, 7, 3, 8, 4, 9], dtype=np.int32)


# ----------------------------------------------------------------------------
# Pallas kernel: full YOLO loss for one lane-dense [32, tile_n] slab.
# ----------------------------------------------------------------------------
def _yolo_loss_kernel(pred_ref, targ_ref, part_ref, *,
                      inv_grid, lambda_coord, lambda_noobj):
    pred = pred_ref[...].astype(jnp.float32)      # (32, Tn)
    targ = targ_ref[...].astype(jnp.float32)

    inv_g = jnp.float32(inv_grid)
    lc = jnp.float32(lambda_coord)
    ln = jnp.float32(lambda_noobj)

    # Interleaved box rows: [x0,x1, y0,y1, w0,w1, h0,h1, c0,c1]
    xy_p, wh_p, pc = pred[0:4, :], pred[4:8, :], pred[8:10, :]
    xy_t, wh_t, tc = targ[0:4, :], targ[4:8, :], targ[8:10, :]

    conf_t = targ[8:9, :]                          # original target[..., 4]
    coord = (conf_t > 0).astype(jnp.float32)       # (1, Tn) object cells
    noobj = (conf_t == 0).astype(jnp.float32)      # (1, Tn) background (+ lane pad)

    # ---- IoU of both boxes at once (rows 0/1 = box0/box1) --------------------
    ctr_p, ctr_t = xy_p * inv_g, xy_t * inv_g      # (4, Tn)
    half_p, half_t = 0.5 * wh_p, 0.5 * wh_t
    p1, p2 = ctr_p - half_p, ctr_p + half_p
    t1, t2 = ctr_t - half_t, ctr_t + half_t
    ov = jnp.maximum(jnp.minimum(p2, t2) - jnp.maximum(p1, t1), 0.0)  # [iw0,iw1,ih0,ih1]
    inter = ov[0:2, :] * ov[2:4, :]                # (2, Tn)
    area_p = wh_p[0:2, :] * wh_p[2:4, :]           # w * h per box
    area_t = wh_t[0:2, :] * wh_t[2:4, :]
    denom = area_p + area_t - inter
    # Guard 0/0 (background / padded cells); masked out by `coord` below.
    iou = inter * pl.reciprocal(jnp.where(denom == 0.0, 1.0, denom), approx=False)

    iou0, iou1 = iou[0:1, :], iou[1:2, :]
    iou_max = jnp.maximum(iou0, iou1)              # (1, Tn)
    resp1 = (iou1 > iou0).astype(jnp.float32)      # ties -> box 0 (matches reference)
    resp = jnp.concatenate([1.0 - resp1, resp1], axis=0)   # (2, Tn)
    mask = coord * resp                            # responsible-box mask per row

    # ---- Location loss (box0 = row 0, box1 = row 1) ---------------------------
    dxy = (xy_p - xy_t) ** 2                       # (4, Tn)
    d_xy = dxy[0:2, :] + dxy[2:4, :]               # (2, Tn): x^2 + y^2 diffs per box
    guard = mask > 0                               # only responsible cells hit sqrt
    sp_w = jnp.sqrt(jnp.where(guard, wh_p[0:2, :], 1.0))
    st_w = jnp.sqrt(jnp.where(guard, wh_t[0:2, :], 1.0))
    sp_h = jnp.sqrt(jnp.where(guard, wh_p[2:4, :], 1.0))
    st_h = jnp.sqrt(jnp.where(guard, wh_t[2:4, :], 1.0))
    d_wh = (sp_w - st_w) ** 2 + (sp_h - st_h) ** 2
    e_loc = mask * (d_xy + d_wh)                   # (2, Tn), weight lambda_coord

    # ---- Confidence losses (both boxes' conf rows together) -------------------
    e_conf = (ln * noobj * (pc - tc) ** 2          # no-object loss
              + mask * (pc - iou_max) ** 2         # response (contain) loss
              + ln * (coord - mask) * pc * pc)     # not-response loss

    # ---- Class loss: sublane-aligned 16-row slice ------------------------------
    e_cls = coord * (pred[16:32, :] - targ[16:32, :]) ** 2   # (16, Tn)

    # ---- Two small reductions, no re-layout ------------------------------------
    partial = jnp.sum(lc * e_loc + e_conf) + jnp.sum(e_cls)
    # Lane-dense (8,128) partial-sum block (unmasked vst); reduced later in XLA.
    part_ref[...] = jnp.full(part_ref.shape, partial, dtype=jnp.float32)


# ----------------------------------------------------------------------------
# Wrapper (jitted so prep fuses into the same dispatch as the pallas_call)
# ----------------------------------------------------------------------------
def _tiling(n):
    n128 = ((n + LANE - 1) // LANE) * LANE
    if n128 <= MAX_TILE_N:
        return n128, n128
    n_pad = ((n + MAX_TILE_N - 1) // MAX_TILE_N) * MAX_TILE_N
    return MAX_TILE_N, n_pad


def _prep(x, n, n_pad):
    # [B,S,S,26] -> lane-dense [32, n_pad]: rows 0:10 interleaved box features,
    # rows 10:16 zeros, rows 16:32 class scores; padded lanes are exactly zero.
    x2 = x.reshape(n, 26)
    boxes = x2[:, _BOX_PERM]                       # (n, 10)
    cls = x2[:, 10:26]                             # (n, 16)
    zeros6 = jnp.zeros((n, 6), dtype=x.dtype)
    slab = jnp.concatenate([boxes, zeros6, cls], axis=1).T   # (32, n)
    return jnp.pad(slab, ((0, 0), (0, n_pad - n)))


@functools.partial(jax.jit, static_argnames=("grid_num", "lambda_coord", "lambda_noobj"))
def yolo_loss_pallas(output, target, *, grid_num, lambda_coord, lambda_noobj):
    assert output.shape == target.shape and output.shape[-1] == 26
    b = output.shape[0]
    n = b * output.shape[1] * output.shape[2]
    tile_n, n_pad = _tiling(n)
    num_tiles = n_pad // tile_n

    pred = _prep(output, n, n_pad)    # native dtype; cast to f32 inside kernel
    targ = _prep(target, n, n_pad)

    kernel = functools.partial(
        _yolo_loss_kernel,
        inv_grid=1.0 / float(grid_num),
        lambda_coord=float(lambda_coord),
        lambda_noobj=float(lambda_noobj),
    )

    itemsize = int(np.dtype(pred.dtype).itemsize)
    parts = pl.pallas_call(
        kernel,
        grid=(num_tiles,),
        in_specs=[
            pl.BlockSpec((FEAT_PAD, tile_n), lambda i: (0, i)),
            pl.BlockSpec((FEAT_PAD, tile_n), lambda i: (0, i)),
        ],
        out_specs=pl.BlockSpec((SUB, LANE), lambda i: (i, 0)),
        out_shape=jax.ShapeDtypeStruct((num_tiles * SUB, LANE), jnp.float32),
        compiler_params=pltpu.CompilerParams(
            dimension_semantics=("parallel",),
        ),
        cost_estimate=pl.CostEstimate(
            flops=int(180 * n_pad),
            transcendentals=int(10 * n_pad),
            bytes_accessed=int(2 * FEAT_PAD * n_pad * itemsize
                               + num_tiles * SUB * LANE * 4),
        ),
    )(pred, targ)

    partials = parts.reshape(num_tiles, SUB, LANE)[:, 0, 0]   # one scalar per tile
    return jnp.sum(partials) / jnp.float32(b)


# ----------------------------------------------------------------------------
# Pure-numpy reference mirroring the PyTorch control flow (boolean gathers etc.)
# ----------------------------------------------------------------------------
def yolo_loss_ref(pred, targ, *, grid_num, lambda_coord, lambda_noobj):
    pred = np.asarray(pred, np.float32)
    targ = np.asarray(targ, np.float32)
    b = pred.shape[0]
    p = pred.reshape(-1, 26)
    t = targ.reshape(-1, 26)
    coord = t[:, 4] > 0
    noobj = t[:, 4] == 0
    cp, ct = p[coord], t[coord]
    nump, numt = p[noobj], t[noobj]
    class_loss = np.sum((cp[:, 10:] - ct[:, 10:]) ** 2)
    no_object_loss = (np.sum((nump[:, 4] - numt[:, 4]) ** 2)
                      + np.sum((nump[:, 9] - numt[:, 9]) ** 2))
    bp, bt = cp[:, :10], ct[:, :10]

    def xyxy(x):
        o = np.zeros_like(x)
        o[:, :2] = x[:, :2] / grid_num - 0.5 * x[:, 2:4]
        o[:, 2:4] = x[:, :2] / grid_num + 0.5 * x[:, 2:4]
        o[:, 5:7] = x[:, 5:7] / grid_num - 0.5 * x[:, 7:9]
        o[:, 7:9] = x[:, 5:7] / grid_num + 0.5 * x[:, 7:9]
        o[:, 4], o[:, 9] = x[:, 4], x[:, 9]
        return o

    def iou_box(a, c):
        ltx = np.maximum(a[:, 0], c[:, 0]); lty = np.maximum(a[:, 1], c[:, 1])
        rbx = np.minimum(a[:, 2], c[:, 2]); rby = np.minimum(a[:, 3], c[:, 3])
        iw = np.clip(rbx - ltx, 0, None); ih = np.clip(rby - lty, 0, None)
        inter = iw * ih
        a1 = (a[:, 2] - a[:, 0]) * (a[:, 3] - a[:, 1])
        a2 = (c[:, 2] - c[:, 0]) * (c[:, 3] - c[:, 1])
        return inter / (a1 + a2 - inter)

    bpx, btx = xyxy(bp), xyxy(bt)
    iou = np.stack([iou_box(bpx[:, :5], btx[:, :5]),
                    iou_box(bpx[:, 5:], btx[:, 5:])], axis=1)
    iou_max = iou.max(1)
    max_idx = iou.argmax(1)
    resp = np.zeros((iou_max.shape[0], 2), bool)
    resp[max_idx == 1, 1] = True
    resp[max_idx == 0, 0] = True
    resp = resp.reshape(-1)
    notresp = ~resp
    bp5 = bp.reshape(-1, 5)
    bt5 = bt.reshape(-1, 5).copy()
    bt5[resp, 4] = iou_max
    bt5[notresp, 4] = 0.0
    pr, tr = bp5[resp], bt5[resp]
    response_loss = np.sum((pr[:, 4] - tr[:, 4]) ** 2)
    location_loss = (np.sum((pr[:, :2] - tr[:, :2]) ** 2)
                     + np.sum((np.sqrt(pr[:, 2:4]) - np.sqrt(tr[:, 2:4])) ** 2))
    pn, tn = bp5[notresp], bt5[notresp]
    not_response_loss = np.sum((pn[:, 4] - tn[:, 4]) ** 2)
    loss = (lambda_coord * location_loss + class_loss + response_loss
            + lambda_noobj * (not_response_loss + no_object_loss))
    return np.float32(loss / b)


if __name__ == "__main__":
    GRID_NUM = 7
    BBOX_NUM = 2        # implied by the 2-box (10 = 2*5) layout
    LAMBDA_COORD = 5.0
    LAMBDA_NOOBJ = 0.5
    B = 2

    key = jax.random.PRNGKey(0)
    k1, k2, k3 = jax.random.split(key, 3)

    # Predictions: uniform(0,1) so widths/heights are valid under sqrt (as in YOLO).
    output = jax.random.uniform(k1, (B, GRID_NUM, GRID_NUM, 26), dtype=jnp.float32)
    # Targets: uniform boxes/classes, confidence channels set to {0,1} per cell.
    target = jax.random.uniform(k2, (B, GRID_NUM, GRID_NUM, 26), dtype=jnp.float32)
    obj = (jax.random.uniform(k3, (B, GRID_NUM, GRID_NUM)) < 0.3).astype(jnp.float32)
    target = target.at[..., 4].set(obj)
    target = target.at[..., 9].set(obj)

    loss = yolo_loss_pallas(output, target,
                            grid_num=GRID_NUM,
                            lambda_coord=LAMBDA_COORD,
                            lambda_noobj=LAMBDA_NOOBJ)
    loss = jax.block_until_ready(loss)

    ref = yolo_loss_ref(np.asarray(output), np.asarray(target),
                        grid_num=GRID_NUM,
                        lambda_coord=LAMBDA_COORD,
                        lambda_noobj=LAMBDA_NOOBJ)

    np.testing.assert_allclose(np.asarray(loss), ref, rtol=2e-4, atol=2e-4)
    print("KERNEL_OK")
</pallas_src>

<mosaic_0001>
module attributes {stable_mosaic.version = 11 : i64} {
  func.func @_yolo_loss_kernel(%arg0: i32, %arg1: memref<32x128xf32, #tpu.memory_space<vmem>>, %arg2: memref<32x128xf32, #tpu.memory_space<vmem>>, %arg3: memref<8x128xf32, #tpu.memory_space<vmem>>) attributes {dimension_semantics = [#tpu.dimension_semantics<parallel>], iteration_bounds = array<i64: 1>, scalar_prefetch = 0 : i64, scratch_operands = 0 : i64, tpu.core_type = #tpu.core_type<tc>, window_params = [{transform_indices = @transform_0, window_bounds = array<i64: 32, 128>}, {transform_indices = @transform_1, window_bounds = array<i64: 32, 128>}, {transform_indices = @transform_2, window_bounds = array<i64: 8, 128>}]} {
    %c0 = arith.constant 0 : index
    %c0_0 = arith.constant 0 : index
    %0 = vector.load %arg1[%c0, %c0_0] : memref<32x128xf32, #tpu.memory_space<vmem>>, vector<32x128xf32>
    %c0_1 = arith.constant 0 : index
    %c0_2 = arith.constant 0 : index
    %1 = vector.load %arg2[%c0_1, %c0_2] : memref<32x128xf32, #tpu.memory_space<vmem>>, vector<32x128xf32>
    %2 = vector.extract_strided_slice %0 {offsets = [0, 0], sizes = [4, 128], strides = [1, 1]} : vector<32x128xf32> to vector<4x128xf32>
    %3 = vector.extract_strided_slice %0 {offsets = [4, 0], sizes = [4, 128], strides = [1, 1]} : vector<32x128xf32> to vector<4x128xf32>
    %4 = vector.extract_strided_slice %0 {offsets = [8, 0], sizes = [2, 128], strides = [1, 1]} : vector<32x128xf32> to vector<2x128xf32>
    %5 = vector.extract_strided_slice %1 {offsets = [0, 0], sizes = [4, 128], strides = [1, 1]} : vector<32x128xf32> to vector<4x128xf32>
    %6 = vector.extract_strided_slice %1 {offsets = [4, 0], sizes = [4, 128], strides = [1, 1]} : vector<32x128xf32> to vector<4x128xf32>
    %7 = vector.extract_strided_slice %1 {offsets = [8, 0], sizes = [2, 128], strides = [1, 1]} : vector<32x128xf32> to vector<2x128xf32>
    %8 = vector.extract_strided_slice %1 {offsets = [8, 0], sizes = [1, 128], strides = [1, 1]} : vector<32x128xf32> to vector<1x128xf32>
    %cst = arith.constant 0.000000e+00 : f32
    %9 = vector.broadcast %cst : f32 to vector<1x128xf32>
    %10 = arith.cmpf ogt, %8, %9 : vector<1x128xf32>
    %11 = arith.extui %10 : vector<1x128xi1> to vector<1x128xi32>
    %12 = arith.sitofp %11 : vector<1x128xi32> to vector<1x128xf32>
    %cst_3 = arith.constant 0.000000e+00 : f32
    %13 = vector.broadcast %cst_3 : f32 to vector<1x128xf32>
    %14 = arith.cmpf oeq, %8, %13 : vector<1x128xf32>
    %15 = arith.extui %14 : vector<1x128xi1> to vector<1x128xi32>
    %16 = arith.sitofp %15 : vector<1x128xi32> to vector<1x128xf32>
    %cst_4 = arith.constant 0.142857149 : f32
    %17 = vector.broadcast %cst_4 : f32 to vector<4x128xf32>
    %18 = arith.mulf %2, %17 : vector<4x128xf32>
    %cst_5 = arith.constant 0.142857149 : f32
    %19 = vector.broadcast %cst_5 : f32 to vector<4x128xf32>
    %20 = arith.mulf %5, %19 : vector<4x128xf32>
    %cst_6 = arith.constant 5.000000e-01 : f32
    %21 = vector.broadcast %cst_6 : f32 to vector<4x128xf32>
    %22 = arith.mulf %21, %3 : vector<4x128xf32>
    %cst_7 = arith.constant 5.000000e-01 : f32
    %23 = vector.broadcast %cst_7 : f32 to vector<4x128xf32>
    %24 = arith.mulf %23, %6 : vector<4x128xf32>
    %25 = arith.subf %18, %22 : vector<4x128xf32>
    %26 = arith.addf %18, %22 : vector<4x128xf32>
    %27 = arith.subf %20, %24 : vector<4x128xf32>
    %28 = arith.addf %20, %24 : vector<4x128xf32>
    %29 = arith.minimumf %26, %28 : vector<4x128xf32>
    %30 = arith.maximumf %25, %27 : vector<4x128xf32>
    %31 = arith.subf %29, %30 : vector<4x128xf32>
    %cst_8 = arith.constant 0.000000e+00 : f32
    %32 = vector.broadcast %cst_8 : f32 to vector<4x128xf32>
    %33 = arith.maximumf %31, %32 : vector<4x128xf32>
    %34 = vector.extract_strided_slice %33 {offsets = [0, 0], sizes = [2, 128], strides = [1, 1]} : vector<4x128xf32> to vector<2x128xf32>
    %35 = vector.extract_strided_slice %33 {offsets = [2, 0], sizes = [2, 128], strides = [1, 1]} : vector<4x128xf32> to vector<2x128xf32>
    %36 = arith.mulf %34, %35 : vector<2x128xf32>
    %37 = vector.extract_strided_slice %3 {offsets = [0, 0], sizes = [2, 128], strides = [1, 1]} : vector<4x128xf32> to vector<2x128xf32>
    %38 = vector.extract_strided_slice %3 {offsets = [2, 0], sizes = [2, 128], strides = [1, 1]} : vector<4x128xf32> to vector<2x128xf32>
    %39 = arith.mulf %37, %38 : vector<2x128xf32>
    %40 = vector.extract_strided_slice %6 {offsets = [0, 0], sizes = [2, 128], strides = [1, 1]} : vector<4x128xf32> to vector<2x128xf32>
    %41 = vector.extract_strided_slice %6 {offsets = [2, 0], sizes = [2, 128], strides = [1, 1]} : vector<4x128xf32> to vector<2x128xf32>
    %42 = arith.mulf %40, %41 : vector<2x128xf32>
    %43 = arith.addf %39, %42 : vector<2x128xf32>
    %44 = arith.subf %43, %36 : vector<2x128xf32>
    %cst_9 = arith.constant 0.000000e+00 : f32
    %45 = vector.broadcast %cst_9 : f32 to vector<2x128xf32>
    %46 = arith.cmpf oeq, %44, %45 : vector<2x128xf32>
    %cst_10 = arith.constant 1.000000e+00 : f32
    %47 = vector.broadcast %cst_10 : f32 to vector<2x128xf32>
    %48 = arith.select %46, %47, %44 : vector<2x128xi1>, vector<2x128xf32>
    %49 = tpu.reciprocal %48 : vector<2x128xf32> -> vector<2x128xf32>
    %50 = arith.mulf %36, %49 : vector<2x128xf32>
    %51 = vector.extract_strided_slice %50 {offsets = [0, 0], sizes = [1, 128], strides = [1, 1]} : vector<2x128xf32> to vector<1x128xf32>
    %52 = vector.extract_strided_slice %50 {offsets = [1, 0], sizes = [1, 128], strides = [1, 1]} : vector<2x128xf32> to vector<1x128xf32>
    %53 = arith.maximumf %51, %52 : vector<1x128xf32>
    %54 = arith.cmpf ogt, %52, %51 : vector<1x128xf32>
    %55 = arith.extui %54 : vector<1x128xi1> to vector<1x128xi32>
    %56 = arith.sitofp %55 : vector<1x128xi32> to vector<1x128xf32>
    %cst_11 = arith.constant 1.000000e+00 : f32
    %57 = vector.broadcast %cst_11 : f32 to vector<1x128xf32>
    %58 = arith.subf %57, %56 : vector<1x128xf32>
    %59 = tpu.concatenate %58, %56 in 0 : vector<1x128xf32>, vector<1x128xf32> -> vector<2x128xf32>
    %60 = vector.broadcast %12 : vector<1x128xf32> to vector<2x128xf32>
    %61 = arith.mulf %60, %59 : vector<2x128xf32>
    %62 = arith.subf %2, %5 : vector<4x128xf32>
    %63 = arith.mulf %62, %62 : vector<4x128xf32>
    %64 = vector.extract_strided_slice %63 {offsets = [0, 0], sizes = [2, 128], strides = [1, 1]} : vector<4x128xf32> to vector<2x128xf32>
    %65 = vector.extract_strided_slice %63 {offsets = [2, 0], sizes = [2, 128], strides = [1, 1]} : vector<4x128xf32> to vector<2x128xf32>
    %66 = arith.addf %64, %65 : vector<2x128xf32>
    %cst_12 = arith.constant 0.000000e+00 : f32
    %67 = vector.broadcast %cst_12 : f32 to vector<2x128xf32>
    %68 = arith.cmpf ogt, %61, %67 : vector<2x128xf32>
    %69 = vector.extract_strided_slice %3 {offsets = [0, 0], sizes = [2, 128], strides = [1, 1]} : vector<4x128xf32> to vector<2x128xf32>
    %cst_13 = arith.constant 1.000000e+00 : f32
    %70 = vector.broadcast %cst_13 : f32 to vector<2x128xf32>
    %71 = arith.select %68, %69, %70 : vector<2x128xi1>, vector<2x128xf32>
    %72 = math.sqrt %71 : vector<2x128xf32>
    %73 = vector.extract_strided_slice %6 {offsets = [0, 0], sizes = [2, 128], strides = [1, 1]} : vector<4x128xf32> to vector<2x128xf32>
    %cst_14 = arith.constant 1.000000e+00 : f32
    %74 = vector.broadcast %cst_14 : f32 to vector<2x128xf32>
    %75 = arith.select %68, %73, %74 : vector<2x128xi1>, vector<2x128xf32>
    %76 = math.sqrt %75 : vector<2x128xf32>
    %77 = vector.extract_strided_slice %3 {offsets = [2, 0], sizes = [2, 128], strides = [1, 1]} : vector<4x128xf32> to vector<2x128xf32>
    %cst_15 = arith.constant 1.000000e+00 : f32
    %78 = vector.broadcast %cst_15 : f32 to vector<2x128xf32>
    %79 = arith.select %68, %77, %78 : vector<2x128xi1>, vector<2x128xf32>
    %80 = math.sqrt %79 : vector<2x128xf32>
    %81 = vector.extract_strided_slice %6 {offsets = [2, 0], sizes = [2, 128], strides = [1, 1]} : vector<4x128xf32> to vector<2x128xf32>
    %cst_16 = arith.constant 1.000000e+00 : f32
    %82 = vector.broadcast %cst_16 : f32 to vector<2x128xf32>
    %83 = arith.select %68, %81, %82 : vector<2x128xi1>, vector<2x128xf32>
    %84 = math.sqrt %83 : vector<2x128xf32>
    %85 = arith.subf %72, %76 : vector<2x128xf32>
    %86 = arith.mulf %85, %85 : vector<2x128xf32>
    %87 = arith.subf %80, %84 : vector<2x128xf32>
    %88 = arith.mulf %87, %87 : vector<2x128xf32>
    %89 = arith.addf %86, %88 : vector<2x128xf32>
    %90 = arith.addf %66, %89 : vector<2x128xf32>
    %91 = arith.mulf %61, %90 : vector<2x128xf32>
    %cst_17 = arith.constant 5.000000e-01 : f32
    %92 = vector.broadcast %cst_17 : f32 to vector<1x128xf32>
    %93 = arith.mulf %92, %16 : vector<1x128xf32>
    %94 = arith.subf %4, %7 : vector<2x128xf32>
    %95 = arith.mulf %94, %94 : vector<2x128xf32>
    %96 = vector.broadcast %93 : vector<1x128xf32> to vector<2x128xf32>
    %97 = arith.mulf %96, %95 : vector<2x128xf32>
    %98 = vector.broadcast %53 : vector<1x128xf32> to vector<2x128xf32>
    %99 = arith.subf %4, %98 : vector<2x128xf32>
    %100 = arith.mulf %99, %99 : vector<2x128xf32>
    %101 = arith.mulf %61, %100 : vector<2x128xf32>
    %102 = arith.addf %97, %101 : vector<2x128xf32>
    %103 = vector.broadcast %12 : vector<1x128xf32> to vector<2x128xf32>
    %104 = arith.subf %103, %61 : vector<2x128xf32>
    %cst_18 = arith.constant 5.000000e-01 : f32
    %105 = vector.broadcast %cst_18 : f32 to vector<2x128xf32>
    %106 = arith.mulf %105, %104 : vector<2x128xf32>
    %107 = arith.mulf %106, %4 : vector<2x128xf32>
    %108 = arith.mulf %107, %4 : vector<2x128xf32>
    %109 = arith.addf %102, %108 : vector<2x128xf32>
    %110 = vector.extract_strided_slice %0 {offsets = [16, 0], sizes = [16, 128], strides = [1, 1]} : vector<32x128xf32> to vector<16x128xf32>
    %111 = vector.extract_strided_slice %1 {offsets = [16, 0], sizes = [16, 128], strides = [1, 1]} : vector<32x128xf32> to vector<16x128xf32>
    %112 = arith.subf %110, %111 : vector<16x128xf32>
    %113 = arith.mulf %112, %112 : vector<16x128xf32>
    %114 = vector.broadcast %12 : vector<1x128xf32> to vector<16x128xf32>
    %115 = arith.mulf %114, %113 : vector<16x128xf32>
    %cst_19 = arith.constant 5.000000e+00 : f32
    %116 = vector.broadcast %cst_19 : f32 to vector<2x128xf32>
    %117 = arith.mulf %116, %91 : vector<2x128xf32>
    %118 = arith.addf %117, %109 : vector<2x128xf32>
    %119 = vector.shape_cast %118 : vector<2x128xf32> to vector<1x2x128xf32>
    %cst_20 = arith.constant dense<0.000000e+00> : vector<1xf32>
    %120 = vector.multi_reduction <add>, %119, %cst_20 [1, 2] : vector<1x2x128xf32> to vector<1xf32>
    %121 = vector.shape_cast %120 : vector<1xf32> to vector<1x1x1xf32>
    %122 = vector.extract %121[0, 0, 0] : f32 from vector<1x1x1xf32>
    %123 = vector.shape_cast %115 : vector<16x128xf32> to vector<1x16x128xf32>
    %cst_21 = arith.constant dense<0.000000e+00> : vector<1xf32>
    %124 = vector.multi_reduction <add>, %123, %cst_21 [1, 2] : vector<1x16x128xf32> to vector<1xf32>
    %125 = vector.shape_cast %124 : vector<1xf32> to vector<1x1x1xf32>
    %126 = vector.extract %125[0, 0, 0] : f32 from vector<1x1x1xf32>
    %127 = arith.addf %122, %126 : f32
    %128 = vector.broadcast %127 : f32 to vector<8x128xf32>
    %c0_22 = arith.constant 0 : index
    %c0_23 = arith.constant 0 : index
    %129 = vector.load %arg3[%c0_22, %c0_23] : memref<8x128xf32, #tpu.memory_space<vmem>>, vector<8x128xf32>
    tpu.vector_store %arg3[%c0_22, %c0_23], %128 {strides = array<i32>} : memref<8x128xf32, #tpu.memory_space<vmem>>, vector<8x128xf32>,
    return
  }
  func.func @transform_0(%arg0: i32) -> (i32, i32) {
    %c0_i32 = arith.constant 0 : i32
    %c0_i32_0 = arith.constant 0 : i32
    return %c0_i32, %arg0 : i32, i32
  }
  func.func @transform_1(%arg0: i32) -> (i32, i32) {
    %c0_i32 = arith.constant 0 : i32
    %c0_i32_0 = arith.constant 0 : i32
    return %c0_i32, %arg0 : i32, i32
  }
  func.func @transform_2(%arg0: i32) -> (i32, i32) {
    %c0_i32 = arith.constant 0 : i32
    %c0_i32_0 = arith.constant 0 : i32
    return %arg0, %c0_i32 : i32, i32
  }
}

</mosaic_0001>

<bundles_post_ra>
// kernel: yolo_loss_pallas.1
= control target key start
LH: loop header
LB: loop body
LE: loop exit
PB: predicated region body
PF: predicated region fallthrough
CT: control target
= control target key end

     0   :  { %v82_v2 = vlaneseq  ;;  %v216_v21 = vmov 0.0   ;;  %vm80_vm3 = vcmask 1040384   ;;  %vm170_vm14 = vcmask 1041408   ;;  %s306_s0 = inlined_call_operand.vmem [shape: f32[32,128], index: 0, kind: input, shape index: {}]   ;;  %s307_s1 = inlined_call_operand.vmem [shape: f32[32,128], index: 1, kind: input, shape index: {}]   ;;  %s308_s2 = inlined_call_operand.vmem [shape: f32[8,128], index: 2, kind: output, shape index: {}]  }
   0x1   :  { %v235_v0 = vld [vmem:[%s306_s0] sm:$0xff]  ;;  %v247_v5 = vld [vmem:[%s307_s1 + $0x8] sm:$0xff]  ;;  %v13_v13 = vld [vmem:[%s306_s0 + $0x10] sm:$0xff] }
   0x2   :  { %v240_v1 = vld [vmem:[%s307_s1] sm:$0xff]  ;;  %v25_v3 = vmul.f32 0.14285715, %v235_v0  ;;  %v27_v4 = vmul.f32 0.5, %v235_v0  ;;  %v83_v10 = vshrl.u32 %v82_v2, 7  ;;  %vm19_vm0 = vcmp.gt.f32.partialorder %v247_v5, 0.0 }
   0x3   :  { %v26_v6 = vmul.f32 0.14285715, %v240_v1  ;;  %v28_v7 = vmul.f32 0.5, %v240_v1  ;;  %v14_v16 = vld [vmem:[%s306_s0 + $0x18] sm:$0xff]  ;;  %v17_v17 = vld [vmem:[%s307_s1 + $0x10] sm:$0xff]  ;;  %v48_v19 = vrot.slane %v235_v0, 2 }
   0x4   :  { %v30_v8 = vrot.slane %v27_v4, 4  ;;  %v18_v18 = vld [vmem:[%s307_s1 + $0x18] sm:$0xff]  ;;  %v265_v20 = vsub.s32 0, %v83_v10  ;;  %v198_v22 = vsel %vm19_vm0, 1.0, %v216_v21  ;;  %v52_v25 = vrot.slane %v240_v1, 2  ;;  %v12_v2 = vld [vmem:[%s306_s0 + $0x8] sm:$0xff] }
   0x5   :  { %v35_v9 = vrot.slane %v28_v7, 4  ;;  %v162_v26 = vsub.f32 %v13_v13, %v17_v17  ;;  %v163_v27 = vsub.f32 %v14_v16, %v18_v18  ;;  %v50_v33 = vmul.f32 %v48_v19, %v235_v0 }
   0x6   :  { %v32_v11 = vsub.f32 %v25_v3, %v30_v8  ;;  %v33_v12 = vadd.f32 %v30_v8, %v25_v3  ;;  %v269_v29 = vrot.slane %v198_v22, %v265_v20  ;;  %v54_v34 = vmul.f32 %v52_v25, %v240_v1 }
   0x7   :  { %v37_v14 = vsub.f32 %v26_v6, %v35_v9  ;;  %v38_v15 = vadd.f32 %v35_v9, %v26_v6  ;;  %v164_v30 = vmul.f32 %v162_v26, %v162_v26  ;;  %v165_v31 = vmul.f32 %v163_v27, %v163_v27 }
   0x8   :  { %v55_v40 = vadd.f32 %v54_v34, %v50_v33  ;;  %v94_v53 = vrot.slane %v235_v0, 4  ;;  %v104_v54 = vrot.slane %v240_v1, 4  ;;  %v114_v55 = vrot.slane %v235_v0, 6 }
   0x9   :  { %v39_v23 = vmin.f32 %v33_v12, %v38_v15  ;;  %v40_v24 = vmax.f32 %v32_v11, %v37_v14  ;;  %v166_v35 = vmul.f32 %v164_v30, %v269_v29  ;;  %v167_v36 = vmul.f32 %v165_v31, %v269_v29 }
   0xa   :  { %v124_v57 = vrot.slane %v240_v1, 6  ;;  %vm22_vm5 = vcmp.eq.f32.partialorder %v247_v5, 0.0  ;;  %v87_v4 = vsub.f32 %v235_v0, %v240_v1  ;;  %v142_v7 = vsub.f32 %v12_v2, %v247_v5 }
   0xb   :  { %v41_v28 = vsub.f32 %v39_v23, %v40_v24  ;;  %v275_v38 = vadd.f32 %v167_v36, %v166_v35  ;;  %v199_v3 = vsel %vm22_vm5, 1.0, %v216_v21 }
   0xc   :  { %v141_v6 = vmul.f32 0.5, %v199_v3  ;;  %v88_v9 = vmul.f32 %v87_v4, %v87_v4  ;;  %v143_v10 = vmul.f32 %v142_v7, %v142_v7 }
   0xd   :  { %v42_v32 = vmax.f32 %v41_v28, 0.0 }
   0xe   :  { %v147_v11 = vrot.slane %v141_v6, %v265_v20 }
   0xf   :  { %v44_v37 = vrot.slane %v42_v32, 2 }
  0x10   :  { %v148_v34 = vmul.f32 %v147_v11, %v143_v10 }
  0x11   :  { %v46_v39 = vmul.f32 %v44_v37, %v42_v32 }
  0x13   :  { %v57_v41 = vrot.slane %v46_v39, 4 }
  0x15   :  { %v59_v42 = vsub.f32 %v55_v40, %v57_v41 }
  0x17   :  { %vm60_vm1 = vcmp.eq.f32.partialorder %v59_v42, 0.0 }
  0x18   :  { %v61_v43 = vsel %vm60_vm1, 1.0, %v59_v42 }
  0x19   :  { %206 = vrcp.f32 %v61_v43 }
  0x23   :  { %v207_v44 = vpop.eup %206 }
  0x24   :  { %v64_v45 = vrot.slane %v207_v44, 4 }
  0x26   :  { %v66_v46 = vmul.f32 %v64_v45, %v46_v39 }
  0x28   :  { %v71_v47 = vrot.slane %v66_v46, 7  ;;  %v68_v50 = vrot.slane %v66_v46, 1 }
  0x2a   :  { %vm73_vm2 = vcmp.gt.f32.partialorder %v66_v46, %v71_v47  ;;  %v70_v58 = vmax.f32 %v66_v46, %v68_v50 }
  0x2b   :  { %v200_v48 = vsel %vm73_vm2, 1.0, %v216_v21 }
  0x2c   :  { %v76_v49 = vsub.f32 1.0, %v200_v48  ;;  %v152_v63 = vrot.slane %v70_v58, %v265_v20 }
  0x2e   :  { %v78_v51 = vrot.slane %v76_v49, 1  ;;  %v153_v8 = vsub.f32 %v12_v2, %v152_v63 }
  0x30   :  { %v81_v52 = vsel %vm80_vm3, %v78_v51, %v200_v48  ;;  %v154_v12 = vmul.f32 %v153_v8, %v153_v8 }
  0x31   :  { %v281_v56 = vmul.f32 %v269_v29, %v81_v52 }
  0x33   :  { %vm93_vm4 = vcmp.gt.f32.partialorder %v281_v56, 0.0  ;;  %v157_v13 = vsub.f32 %v269_v29, %v281_v56  ;;  %v90_v29 = vrot.slane %v88_v9, 2  ;;  %v155_v37 = vmul.f32 %v154_v12, %v281_v56 }
  0x34   :  { %v96_v59 = vsel %vm93_vm4, %v94_v53, 1.0  ;;  %v106_v60 = vsel %vm93_vm4, %v104_v54, 1.0  ;;  %v116_v61 = vsel %vm93_vm4, %v114_v55, 1.0  ;;  %v126_v62 = vsel %vm93_vm4, %v124_v57, 1.0 }
  0x35   :  { %208 = vrsqrt.f32 %v96_v59  ;;  %vm99_vm6 = vcmp.eq.f32.partialorder %v96_v59, inf  ;;  %vm101_vm7 = vcmp.eq.f32.partialorder %v96_v59, 0.0  ;;  %v102_v15 = vand.u32 2147483648, %v96_v59 }
  0x36   :  { %210 = vrsqrt.f32 %v106_v60  ;;  %vm109_vm8 = vcmp.eq.f32.partialorder %v106_v60, inf  ;;  %vm111_vm9 = vcmp.eq.f32.partialorder %v106_v60, 0.0  ;;  %v112_v0 = vand.u32 2147483648, %v106_v60 }
  0x37   :  { %212 = vrsqrt.f32 %v116_v61  ;;  %vm119_vm10 = vcmp.eq.f32.partialorder %v116_v61, inf  ;;  %vm121_vm11 = vcmp.eq.f32.partialorder %v116_v61, 0.0  ;;  %v122_v18 = vand.u32 2147483648, %v116_v61 }
  0x38   :  { %214 = vrsqrt.f32 %v126_v62  ;;  %vm129_vm12 = vcmp.eq.f32.partialorder %v126_v62, inf  ;;  %vm131_vm13 = vcmp.eq.f32.partialorder %v126_v62, 0.0  ;;  %v132_v22 = vand.u32 2147483648, %v126_v62 }
  0x39   :  { %v158_v26 = vmul.f32 0.5, %v157_v13  ;;  %v92_v40 = vadd.f32 %v90_v29, %v88_v9  ;;  %v156_v43 = vadd.f32 %v155_v37, %v148_v34 }
  0x3b   :  { %v159_v39 = vmul.f32 %v158_v26, %v12_v2 }
  0x3d   :  { %v160_v44 = vmul.f32 %v159_v39, %v12_v2 }
  0x3f   :  { %v209_v14 = vpop.eup %208  ;;  %v161_v47 = vadd.f32 %v160_v44, %v156_v43 }
  0x40   :  { %v211_v16 = vpop.eup %210  ;;  %v98_v17 = vmul.f32 %v209_v14, %v96_v59 }
  0x41   :  { %v213_v1 = vpop.eup %212  ;;  %v108_v5 = vmul.f32 %v211_v16, %v106_v60 }
  0x42   :  { %v215_v19 = vpop.eup %214  ;;  %v100_v20 = vsel %vm99_vm6, %v96_v59, %v98_v17  ;;  %v118_v21 = vmul.f32 %v213_v1, %v116_v61 }
  0x43   :  { %v103_v23 = vsel %vm101_vm7, %v102_v15, %v100_v20  ;;  %v110_v24 = vsel %vm109_vm8, %v106_v60, %v108_v5  ;;  %v128_v25 = vmul.f32 %v215_v19, %v126_v62 }
  0x44   :  { %v113_v27 = vsel %vm111_vm9, %v112_v0, %v110_v24  ;;  %v120_v28 = vsel %vm119_vm10, %v116_v61, %v118_v21 }
  0x45   :  { %v123_v30 = vsel %vm121_vm11, %v122_v18, %v120_v28  ;;  %v130_v31 = vsel %vm129_vm12, %v126_v62, %v128_v25  ;;  %v134_v32 = vsub.f32 %v103_v23, %v113_v27 }
  0x46   :  { %v133_v33 = vsel %vm131_vm13, %v132_v22, %v130_v31 }
  0x47   :  { %v135_v35 = vmul.f32 %v134_v32, %v134_v32  ;;  %v136_v36 = vsub.f32 %v123_v30, %v133_v33 }
  0x49   :  { %v137_v41 = vmul.f32 %v136_v36, %v136_v36 }
  0x4b   :  { %v138_v42 = vadd.f32 %v137_v41, %v135_v35 }
  0x4d   :  { %v139_v45 = vadd.f32 %v138_v42, %v92_v40 }
  0x4f   :  { %v140_v46 = vmul.f32 %v139_v45, %v281_v56 }
  0x51   :  { %v168_v48 = vmul.f32 5.0, %v140_v46 }
  0x53   :  { %v169_v49 = vadd.f32 %v168_v48, %v161_v47 }
  0x55   :  { %v171_v50 = vsel %vm170_vm14, %v169_v49, 0.0 }
  0x56   :  { %172 = vadd.xlane.f32.xlu0 %v171_v50 }
  0x5a   :  { %182 = vadd.xlane.f32.xlu0 %v275_v38 }
  0xe3   :  { %v173_v51 = vpop.xlane.xlu0 %172 }
  0xe4   :  { %v174_v52 = vrot.slane %v173_v51, 4 }
  0xe6   :  { %v175_v53 = vadd.f32 %v174_v52, %v173_v51 }
  0xe7   :  { %v183_v54 = vpop.xlane.xlu0 %182 }
  0xe8   :  { %v176_v55 = vrot.slane %v175_v53, 2  ;;  %v184_v57 = vrot.slane %v183_v54, 4 }
  0xea   :  { %v185_v58 = vadd.f32 %v184_v57, %v183_v54  ;;  %v177_v59 = vadd.f32 %v176_v55, %v175_v53 }
  0xec   :  { %v186_v60 = vrot.slane %v185_v58, 2  ;;  %v178_v61 = vrot.slane %v177_v59, 1 }
  0xee   :  { %v187_v62 = vadd.f32 %v186_v60, %v185_v58  ;;  %v179_v56 = vadd.f32 %v178_v61, %v177_v59 }
  0xf0   :  { %201 = vpush %v179_v56  ;;  %v188_v63 = vrot.slane %v187_v62, 1 }
  0xf2   :  { %v189_v2 = vadd.f32 %v188_v63, %v187_v62 }
  0xf4   :  { %203 = vpush %v189_v2 }
 0x121   :  { %s202_s0 = spop %201 }
 0x125   :  { %s204_s24 = spop %203 }
 0x126   :  { %s191_s25 = sadd.f32 %s204_s24, %s202_s0 }
 0x128   :  { %v192_v38 = vstv %s191_s25 }
 0x129   :  { %193 = vst [vmem:[%s308_s2] sm:$0xff] %v192_v38 }

</bundles_post_ra>
